<compile_context>
chip_gen: v5e
topology: v5e:2x2
jax: 0.10.0
libtpu: 0.0.40
codegen_flags: <defaults>
</compile_context>

<pallas_src>
import functools

import numpy as np
import jax
import jax.numpy as jnp
from jax.experimental import pallas as pl
from jax.experimental.pallas import tpu as pltpu


_TARGET_TILE_BYTES = 2 * 1024 * 1024   # ~2 MiB input block (x2 double-buffered)
_MAX_TR = 512                          # keep the in-block reduction tile modest


def _max_identity(dtype):
    dtype = jnp.dtype(dtype)
    if jnp.issubdtype(dtype, jnp.floating):
        return -jnp.inf
    if jnp.issubdtype(dtype, jnp.integer):
        return int(jnp.iinfo(dtype).min)
    raise TypeError(f"unsupported dtype for max pooling: {dtype}")


def _choose_tiles(P, R, Q, itemsize):
    """Pick (TP, TR) for (P, R, Q) blocks of ~_TARGET_TILE_BYTES.

    Block-shape rule: the minor-two dims of a block must be multiples of the
    native sublane count (8 for f32) or span the full extent, so TP (output
    block second-minor) and TR (input block second-minor) are aligned.
    """
    sublane = max(8, 32 // itemsize)          # 8 (f32), 16 (bf16), 32 (int8)
    lane_bytes = max(Q * itemsize, 1)

    # Reduction tile: whole R when modest, else a sublane-aligned tile.
    tr = min(R, _MAX_TR, max(1, _TARGET_TILE_BYTES // lane_bytes))
    if tr < R:
        tr = max(sublane, (tr // sublane) * sublane)
        tr = min(tr, R)

    # Batch P rows until the (TP, TR, Q) block reaches the byte target.
    tp = min(P, max(1, _TARGET_TILE_BYTES // (tr * lane_bytes)))
    if tp < P:
        tp = min(P, max(sublane, (tp // sublane) * sublane))

    # Keep the block within budget even after alignment rounding.
    while tp * tr * lane_bytes > 2 * _TARGET_TILE_BYTES and tr > sublane:
        tr = max(sublane, ((tr // 2) // sublane) * sublane)

    return int(tp), int(tr)


def _absmax_kernel(x_ref, o_ref, *, nk, r_rem, fill):
    """Max-reduce the middle axis; o_ref is the VMEM-resident accumulator."""
    k = pl.program_id(1)

    @pl.when(k == 0)
    def _init():
        o_ref[...] = jnp.full(o_ref.shape, fill, o_ref.dtype)

    x = x_ref[...]                                        # (TP, TR, Q)
    if r_rem:
        # Last R block is partial: rows >= r_rem hold out-of-bounds garbage;
        # replace them with the max identity before reducing.
        limit = jnp.where(k == nk - 1, r_rem, x.shape[1])
        rows = jax.lax.broadcasted_iota(jnp.int32, x.shape, 1)
        x = jnp.where(rows < limit, x, jnp.asarray(fill, dtype=x.dtype))

    # Per-block reduce, then a cheap running max into the resident output tile.
    o_ref[...] = jnp.maximum(o_ref[...], jnp.max(x, axis=1))


def _pallas_max_middle(x3, *, tile_p=None, tile_r=None):
    """Max over axis 1 of a (P, R, Q) array -> (P, Q) via a Pallas TPU kernel."""
    P, R, Q = x3.shape
    itemsize = jnp.dtype(x3.dtype).itemsize
    tp, tr = _choose_tiles(P, R, Q, itemsize)
    if tile_p is not None:                     # test hooks (must stay aligned)
        tp = min(int(tile_p), P)
    if tile_r is not None:
        tr = min(int(tile_r), R)

    grid = (pl.cdiv(P, tp), pl.cdiv(R, tr))    # reduction axis last
    nk = grid[1]
    r_rem = R % tr
    fill = _max_identity(x3.dtype)

    kernel = functools.partial(_absmax_kernel, nk=nk, r_rem=r_rem, fill=fill)

    return pl.pallas_call(
        kernel,
        out_shape=jax.ShapeDtypeStruct((P, Q), x3.dtype),
        grid=grid,
        in_specs=[pl.BlockSpec((tp, tr, Q), lambda i, k: (i, k, 0))],
        # Output block index is independent of k -> resident accumulator.
        out_specs=pl.BlockSpec((tp, Q), lambda i, k: (i, 0)),
        compiler_params=pltpu.CompilerParams(
            dimension_semantics=("parallel", "arbitrary"),
            vmem_limit_bytes=32 * 1024 * 1024,   # v5e default is only 16 MiB
        ),
        cost_estimate=pl.CostEstimate(
            flops=P * R * Q,
            transcendentals=0,
            bytes_accessed=(P * R * Q + P * Q) * itemsize,
        ),
    )(x3)


def _torch_squeeze_shape(shape, dim):
    """Shape semantics of torch.Tensor.squeeze(dim): no-op if size != 1."""
    ndim = len(shape)
    if dim < -ndim or dim >= ndim:
        raise IndexError(f"Dimension out of range (got {dim} for ndim {ndim})")
    dim = dim % ndim
    if shape[dim] == 1:
        return shape[:dim] + shape[dim + 1:]
    return shape


class AbsoluteMaxPool:
    """JAX/Pallas port of vadim_ml.pytorch.AbsoluteMaxPool (no parameters)."""

    def __init__(self, output_dims, squeeze_dims):
        self.output_dims = output_dims
        self.squeeze_dims = squeeze_dims

    def __call__(self, x):
        output_dims = self.output_dims
        dims_to_squeeze = [-1 - d - output_dims for d in range(self.squeeze_dims)]

        if not dims_to_squeeze:                    # squeeze_dims == 0: just .squeeze()
            return x.reshape(tuple(s for s in x.shape if s != 1))

        # The max loop reduces positive dims {-m for m in dims_to_squeeze}
        # (keepdim=True); they form a contiguous range [lo, hi].
        reduce_axes = sorted(-m for m in dims_to_squeeze)
        lo, hi = reduce_axes[0], reduce_axes[-1]
        shape = x.shape
        if hi >= len(shape):
            raise IndexError("max dim out of range for input tensor")

        pre = int(np.prod(shape[:lo], dtype=np.int64))
        red = int(np.prod(shape[lo:hi + 1], dtype=np.int64))
        post = int(np.prod(shape[hi + 1:], dtype=np.int64))

        # Hot path: the max reduction runs inside the Pallas kernel.
        x3 = x.reshape(pre, red, post)
        pooled = _pallas_max_middle(x3)            # (pre, post)

        # keepdim=True shape after the max loop.
        keep_shape = tuple(1 if lo <= a <= hi else s for a, s in enumerate(shape))
        y = pooled.reshape(keep_shape)

        # Squeeze loop with exact torch semantics (including no-ops),
        # then the final .squeeze() that drops all remaining size-1 dims.
        cur_shape = y.shape
        for max_dim in dims_to_squeeze:
            cur_shape = _torch_squeeze_shape(cur_shape, -max_dim)
        final_shape = tuple(s for s in cur_shape if s != 1)
        return y.reshape(final_shape)


if __name__ == "__main__":
    k0, k1 = jax.random.split(jax.random.PRNGKey(0))

    # 5-D input: keeps dims (0, 1) and the trailing dim, max-pools dims (2, 3).
    # P=6, R=32, Q=16 -> whole problem is one (6, 32, 16) block, grid (1, 1).
    x = jax.random.normal(k0, (2, 3, 4, 8, 16), dtype=jnp.float32)
    pool = AbsoluteMaxPool(output_dims=1, squeeze_dims=2)
    out = jax.block_until_ready(pool(x))

    # Pure-JAX reference of the same (faithfully emulated) torch forward.
    ref = jnp.max(x, axis=(2, 3))
    assert out.shape == (2, 3, 16), out.shape
    assert bool(jnp.allclose(out, ref))

    # Exercise the tiled accumulator path (partial P and R blocks) at a small
    # size by forcing 8x8 tiles: grid (3, 3), R remainder 3, P remainder 4.
    x2 = jax.random.normal(k1, (20, 19, 16), dtype=jnp.float32)
    out2 = jax.block_until_ready(_pallas_max_middle(x2, tile_p=8, tile_r=8))
    assert bool(jnp.allclose(out2, jnp.max(x2, axis=1)))

    print("KERNEL_OK")
</pallas_src>

<mosaic_0001>
module attributes {stable_mosaic.version = 11 : i64} {
  func.func @_absmax_kernel(%arg0: i32, %arg1: i32, %arg2: memref<6x32x16xf32, #tpu.memory_space<vmem>>, %arg3: memref<6x16xf32, #tpu.memory_space<vmem>>) attributes {dimension_semantics = [#tpu.dimension_semantics<parallel>, #tpu.dimension_semantics<arbitrary>], iteration_bounds = array<i64: 1, 1>, scalar_prefetch = 0 : i64, scratch_operands = 0 : i64, tpu.core_type = #tpu.core_type<tc>, window_params = [{transform_indices = @transform_0, window_bounds = array<i64: 6, 32, 16>}, {transform_indices = @transform_1, window_bounds = array<i64: 6, 16>}]} {
    %c0_i32 = arith.constant 0 : i32
    %0 = arith.cmpi eq, %arg1, %c0_i32 : i32
    %1 = arith.extui %0 : i1 to i32
    %c0_i32_0 = arith.constant 0 : i32
    %2 = arith.cmpi ne, %1, %c0_i32_0 : i32
    scf.if %2 {
      %cst_7 = arith.constant 0xFF800000 : f32
      %8 = vector.broadcast %cst_7 : f32 to vector<6x16xf32>
      %c0_8 = arith.constant 0 : index
      %c0_9 = arith.constant 0 : index
      %9 = vector.load %arg3[%c0_8, %c0_9] : memref<6x16xf32, #tpu.memory_space<vmem>>, vector<6x16xf32>
      tpu.vector_store %arg3[%c0_8, %c0_9], %8 {strides = array<i32>} : memref<6x16xf32, #tpu.memory_space<vmem>>, vector<6x16xf32>,
    } else {
    }
    %c0 = arith.constant 0 : index
    %c0_1 = arith.constant 0 : index
    %c0_2 = arith.constant 0 : index
    %3 = vector.load %arg2[%c0, %c0_1, %c0_2] : memref<6x32x16xf32, #tpu.memory_space<vmem>>, vector<6x32x16xf32>
    %c0_3 = arith.constant 0 : index
    %c0_4 = arith.constant 0 : index
    %4 = vector.load %arg3[%c0_3, %c0_4] : memref<6x16xf32, #tpu.memory_space<vmem>>, vector<6x16xf32>
    %cst = arith.constant dense<0xFF800000> : vector<6x16xf32>
    %5 = vector.multi_reduction <maximumf>, %3, %cst [1] : vector<6x32x16xf32> to vector<6x16xf32>
    %6 = arith.maximumf %4, %5 : vector<6x16xf32>
    %c0_5 = arith.constant 0 : index
    %c0_6 = arith.constant 0 : index
    %7 = vector.load %arg3[%c0_5, %c0_6] : memref<6x16xf32, #tpu.memory_space<vmem>>, vector<6x16xf32>
    tpu.vector_store %arg3[%c0_5, %c0_6], %6 {strides = array<i32>} : memref<6x16xf32, #tpu.memory_space<vmem>>, vector<6x16xf32>,
    return
  }
  func.func @transform_0(%arg0: i32, %arg1: i32) -> (i32, i32, i32) {
    %c0_i32 = arith.constant 0 : i32
    %c0_i32_0 = arith.constant 0 : i32
    return %arg0, %arg1, %c0_i32 : i32, i32, i32
  }
  func.func @transform_1(%arg0: i32, %arg1: i32) -> (i32, i32) {
    %c0_i32 = arith.constant 0 : i32
    %c0_i32_0 = arith.constant 0 : i32
    return %arg0, %c0_i32 : i32, i32
  }
}

</mosaic_0001>

<bundles_post_ra>
// kernel: tpu_custom_call.1
= control target key start
LH: loop header
LB: loop body
LE: loop exit
PB: predicated region body
PF: predicated region fallthrough
CT: control target
= control target key end

     0   :  { %vm13_vm0 = vcmask 128000   ;;  %vm40_vm1 = vcmask 130048   ;;  %v183_v3 = vmov -inf   ;;  %s296_s0 = inlined_call_operand.vmem [shape: f32[6,32,16], index: 0, kind: input, shape index: {}]   ;;  %s297_s1 = inlined_call_operand.hbm [shape: f32[6,16], index: 1, kind: output, shape index: {}]  }
   0x1   :  { %v15_v0 = vld [vmem:[%s296_s0] sm:$0xff]  ;;  %v16_v1 = vld [vmem:[%s296_s0 + $0x8] sm:$0xff]  ;;  %v17_v2 = vld [vmem:[%s296_s0 + $0x10] sm:$0xff]  ;;  %14 = vst.msk [vmem:[#allocation2] sm:$0x3f] %vm13_vm0, %v183_v3 }
   0x2   :  { %v18_v4 = vld [vmem:[%s296_s0 + $0x18] sm:$0xff]  ;;  %v19_v5 = vld [vmem:[%s296_s0 + $0x20] sm:$0xff]  ;;  %v20_v6 = vld [vmem:[%s296_s0 + $0x28] sm:$0xff]  ;;  %v41_v7 = vsel %vm40_vm1, %v15_v0, -inf  ;;  %v42_v11 = vsel %vm40_vm1, %v16_v1, -inf  ;;  %v44_v12 = vsel %vm40_vm1, %v17_v2, -inf }
   0x3   :  { %v21_v8 = vld [vmem:[%s296_s0 + $0x30] sm:$0xff]  ;;  %v22_v9 = vld [vmem:[%s296_s0 + $0x38] sm:$0xff]  ;;  %v23_v10 = vld [vmem:[%s296_s0 + $0x40] sm:$0xff]  ;;  %v46_v13 = vsel %vm40_vm1, %v18_v4, -inf  ;;  %v43_v17 = vmax.f32 %v41_v7, %v42_v11  ;;  %v54_v18 = vsel %vm40_vm1, %v19_v5, -inf  ;;  %v55_v19 = vsel %vm40_vm1, %v20_v6, -inf }
   0x4   :  { %v24_v14 = vld [vmem:[%s296_s0 + $0x48] sm:$0xff]  ;;  %v25_v15 = vld [vmem:[%s296_s0 + $0x50] sm:$0xff]  ;;  %v26_v16 = vld [vmem:[%s296_s0 + $0x58] sm:$0xff]  ;;  %v57_v20 = vsel %vm40_vm1, %v21_v8, -inf  ;;  %v56_v24 = vmax.f32 %v54_v18, %v55_v19  ;;  %v59_v25 = vsel %vm40_vm1, %v22_v9, -inf  ;;  %v67_v26 = vsel %vm40_vm1, %v23_v10, -inf }
   0x5   :  { %v27_v21 = vld [vmem:[%s296_s0 + $0x60] sm:$0xff]  ;;  %v28_v22 = vld [vmem:[%s296_s0 + $0x68] sm:$0xff]  ;;  %v29_v23 = vld [vmem:[%s296_s0 + $0x70] sm:$0xff]  ;;  %v68_v27 = vsel %vm40_vm1, %v24_v14, -inf  ;;  %v45_v31 = vmax.f32 %v43_v17, %v44_v12  ;;  %v70_v33 = vsel %vm40_vm1, %v25_v15, -inf  ;;  %v72_v34 = vsel %vm40_vm1, %v26_v16, -inf }
   0x6   :  { %v30_v28 = vld [vmem:[%s296_s0 + $0x78] sm:$0xff]  ;;  %v31_v29 = vld [vmem:[%s296_s0 + $0x80] sm:$0xff]  ;;  %v32_v30 = vld [vmem:[%s296_s0 + $0x88] sm:$0xff]  ;;  %v69_v32 = vmax.f32 %v67_v26, %v68_v27  ;;  %v58_v36 = vmax.f32 %v56_v24, %v57_v20  ;;  %v80_v37 = vsel %vm40_vm1, %v27_v21, -inf  ;;  %v81_v38 = vsel %vm40_vm1, %v28_v22, -inf }
   0x7   :  { %v33_v35 = vld [vmem:[%s296_s0 + $0x90] sm:$0xff]  ;;  %v83_v39 = vsel %vm40_vm1, %v29_v23, -inf  ;;  %v34_v40 = vld [vmem:[%s296_s0 + $0x98] sm:$0xff]  ;;  %v35_v41 = vld [vmem:[%s296_s0 + $0xa0] sm:$0xff]  ;;  %v47_v43 = vmax.f32 %v45_v31, %v46_v13  ;;  %v82_v45 = vmax.f32 %v80_v37, %v81_v38  ;;  %v85_v46 = vsel %vm40_vm1, %v30_v28, -inf }
   0x8   :  { %v36_v42 = vld [vmem:[%s296_s0 + $0xa8] sm:$0xff]  ;;  %v71_v44 = vmax.f32 %v69_v32, %v70_v33  ;;  %v60_v47 = vmax.f32 %v58_v36, %v59_v25  ;;  %v93_v48 = vsel %vm40_vm1, %v31_v29, -inf  ;;  %v94_v49 = vsel %vm40_vm1, %v32_v30, -inf  ;;  %v37_v51 = vld [vmem:[%s296_s0 + $0xb0] sm:$0xff]  ;;  %v38_v52 = vld [vmem:[%s296_s0 + $0xb8] sm:$0xff] }
   0x9   :  { %v96_v50 = vsel %vm40_vm1, %v33_v35, -inf  ;;  %v48_v53 = vrot.slane %v47_v43, 4  ;;  %v84_v55 = vmax.f32 %v82_v45, %v83_v39  ;;  %v95_v56 = vmax.f32 %v93_v48, %v94_v49 }
   0xa   :  { %v73_v54 = vmax.f32 %v71_v44, %v72_v34 }
   0xb   :  { %6 = vsyncpa [#allocation3], 0  ;;  %v61_v57 = vrot.slane %v60_v47, 4  ;;  %v98_v58 = vsel %vm40_vm1, %v34_v40, -inf  ;;  %v106_v59 = vsel %vm40_vm1, %v35_v41, -inf  ;;  %v107_v60 = vsel %vm40_vm1, %v36_v42, -inf }
   0xc   :  { %v49_v61 = vmax.f32 %v47_v43, %v48_v53  ;;  %v74_v62 = vrot.slane %v73_v54, 4  ;;  %v86_v63 = vmax.f32 %v84_v55, %v85_v46  ;;  %v97_v0 = vmax.f32 %v95_v56, %v96_v50  ;;  %v39_v42 = vld [vmem:[#allocation2] sm:$0x3f]  ;;  %s184_s0 = smov [#allocation2]   ;;  %s146_s28 = sshll.u32 %s297_s1, 4  ;;  %s147_s28 = int_to_ptr.hbm [resolvable:$true] %s146_s28 }
   0xd   :  { %v62_v1 = vmax.f32 %v60_v47, %v61_v57  ;;  %v108_v2 = vmax.f32 %v106_v59, %v107_v60  ;;  %v109_v3 = vsel %vm40_vm1, %v37_v51, -inf  ;;  %v111_v4 = vsel %vm40_vm1, %v38_v52, -inf  ;;  %s144_s25 = sshll.u32 %s184_s0, 4  ;;  %s145_s25 = int_to_ptr.vmem [resolvable:$true] %s144_s25 }
   0xe   :  { %v50_v5 = vrot.slane %v49_v61, 2  ;;  %v75_v6 = vmax.f32 %v73_v54, %v74_v62  ;;  %v87_v7 = vrot.slane %v86_v63, 4  ;;  %v99_v8 = vmax.f32 %v97_v0, %v98_v58 }
   0xf   :  { %v63_v9 = vrot.slane %v62_v1, 2  ;;  %v110_v10 = vmax.f32 %v108_v2, %v109_v3  ;;  %vm125_vm2 = vcmask 1041409   ;;  %vm127_vm3 = vcmask 1042434  }
  0x10   :  { %v51_v11 = vmax.f32 %v49_v61, %v50_v5  ;;  %v76_v12 = vrot.slane %v75_v6, 2  ;;  %v88_v13 = vmax.f32 %v86_v63, %v87_v7  ;;  %v100_v14 = vrot.slane %v99_v8, 4 }
  0x11   :  { %v64_v15 = vmax.f32 %v62_v1, %v63_v9  ;;  %v112_v16 = vmax.f32 %v110_v10, %v111_v4  ;;  %vm129_vm4 = vcmask 1043459   ;;  %vm131_vm5 = vcmask 1044484  }
  0x12   :  { %v52_v17 = vrot.slane %v51_v11, 1  ;;  %v77_v18 = vmax.f32 %v75_v6, %v76_v12  ;;  %v89_v19 = vrot.slane %v88_v13, 2  ;;  %v101_v20 = vmax.f32 %v99_v8, %v100_v14 }
  0x13   :  { %v65_v21 = vrot.slane %v64_v15, 1  ;;  %v113_v22 = vrot.slane %v112_v16, 4  ;;  %vm133_vm6 = vcmask 1045509  }
  0x14   :  { %v53_v23 = vmax.f32 %v51_v11, %v52_v17  ;;  %v78_v24 = vrot.slane %v77_v18, 1  ;;  %v90_v25 = vmax.f32 %v88_v13, %v89_v19  ;;  %v102_v26 = vrot.slane %v101_v20, 2 }
  0x15   :  { %v66_v27 = vmax.f32 %v64_v15, %v65_v21  ;;  %v114_v28 = vmax.f32 %v112_v16, %v113_v22 }
  0x16   :  { %v79_v29 = vmax.f32 %v77_v18, %v78_v24  ;;  %v91_v30 = vrot.slane %v90_v25, 1  ;;  %v103_v31 = vmax.f32 %v101_v20, %v102_v26 }
  0x17   :  { %v115_v32 = vrot.slane %v114_v28, 2  ;;  %v126_v33 = vsel %vm125_vm2, %v66_v27, %v53_v23 }
  0x18   :  { %v92_v34 = vmax.f32 %v90_v25, %v91_v30  ;;  %v104_v35 = vrot.slane %v103_v31, 1  ;;  %v128_v36 = vsel %vm127_vm3, %v79_v29, %v126_v33 }
  0x19   :  { %v116_v37 = vmax.f32 %v114_v28, %v115_v32 }
  0x1a   :  { %v105_v38 = vmax.f32 %v103_v31, %v104_v35  ;;  %v130_v39 = vsel %vm129_vm4, %v92_v34, %v128_v36 }
  0x1b   :  { %v117_v40 = vrot.slane %v116_v37, 1 }
  0x1c   :  { %v132_v41 = vsel %vm131_vm5, %v105_v38, %v130_v39 }
  0x1d   :  { %v118_v43 = vmax.f32 %v116_v37, %v117_v40 }
  0x1f   :  { %v134_v44 = vsel %vm133_vm6, %v118_v43, %v132_v41 }
  0x20   :  { %v136_v45 = vmax.f32 %v39_v42, %v134_v44 }
  0x22   :  { %138 = vst.msk [vmem:[#allocation2] sm:$0x3f] %vm13_vm0, %v136_v45 }
  0x23   :  { %149 = dma.vmem_to_hbm [thread:$0]  %s145_s25, 128, %s147_s28, [#allocation3]  }
  0x24   :  { %181 = dma.done.wait [#allocation3], 128  }
  0x25   :  { %182 = vsyncadd [#allocation3], 4294967168 }
  0x26   :  { %154 = vsyncpa [#allocation3], 1 }

</bundles_post_ra>
